<compile_context>
chip_gen: v6e
topology: v6e:2x2x1
jax: 0.10.0
libtpu: 0.0.40
codegen_flags: <defaults>
</compile_context>

<pallas_src>
import functools

import numpy as np
import jax
import jax.numpy as jnp
from jax.experimental import pallas as pl
from jax.experimental.pallas import tpu as pltpu


# ------------------------------ static dims --------------------------------
H = W = 16
K, S = 4, 2
OH = OW = (H - K) // S + 1          # 7
P = OH * OW                         # 49
COUT = 6
D_IN = H * W                        # 256  (= 2 * 128, lane aligned)
D_CONV = COUT * P                   # 294
D_CONV_PAD = 384                    # 294 -> 3 * 128
D_HID = 64
D_HID_PAD = 128                     # lane-dense hidden
D_OUT = 10
D_OUT_PAD = 128                     # lane-dense output store
ROW_ALIGN = 16                      # bf16 sublane packing for the x tile


# ----------------------------- Pallas kernel -------------------------------

def m6_fused_kernel(x_ref, weff_ref, bconv_ref, w1_ref, b1_ref, w2_ref,
                    b2_ref, o_ref):
    # x_ref:    [TB, 256]  bf16
    # weff_ref: [256, 384] bf16   bconv_ref: [1, 384] f32
    # w1_ref:   [384, 128] bf16   b1_ref:    [1, 128] f32
    # w2_ref:   [128, 128] bf16   b2_ref:    [1, 128] f32
    # o_ref:    [TB, 128]  f32
    h = jnp.dot(x_ref[...], weff_ref[...],
                preferred_element_type=jnp.float32)            # conv (as dense)
    h = h + bconv_ref[...]
    h = h * h                                                  # Square1 (f32)
    h = jnp.dot(h.astype(jnp.bfloat16), w1_ref[...],
                preferred_element_type=jnp.float32) + b1_ref[...]   # FC1
    h = h * h                                                  # Square2 (f32)
    o_ref[...] = jnp.dot(h.astype(jnp.bfloat16), w2_ref[...],
                         preferred_element_type=jnp.float32) + b2_ref[...]  # FC2


def _const_spec(shape):
    # whole-array block, same block every grid step (weights / biases)
    return pl.BlockSpec(shape, lambda i: (0,) * len(shape))


@functools.partial(jax.jit, static_argnames=("tb",))
def _fused_call(x_flat, w_eff, b_conv_flat, w1t, b1r, w2t, b2r, *, tb):
    rows = x_flat.shape[0]                                  # multiple of tb
    return pl.pallas_call(
        m6_fused_kernel,
        out_shape=jax.ShapeDtypeStruct((rows, D_OUT_PAD), jnp.float32),
        grid=(rows // tb,),
        in_specs=[
            pl.BlockSpec((tb, D_IN), lambda i: (i, 0)),
            _const_spec(w_eff.shape),
            _const_spec(b_conv_flat.shape),
            _const_spec(w1t.shape),
            _const_spec(b1r.shape),
            _const_spec(w2t.shape),
            _const_spec(b2r.shape),
        ],
        out_specs=pl.BlockSpec((tb, D_OUT_PAD), lambda i: (i, 0)),
        compiler_params=pltpu.CompilerParams(
            dimension_semantics=("parallel",)),
    )(x_flat, w_eff, b_conv_flat, w1t, b1r, w2t, b2r)


# ----------------------------- parameter prep ------------------------------

def prepare_params(params):
    """One-time layout work: conv -> dense W_eff, transposes, padding, bf16."""
    w_conv, b_conv, w1, b1, w2, b2 = params

    # pixel index hit by kernel tap j of output patch p
    idx = np.empty((P, K * K), dtype=np.int32)
    for oh in range(OH):
        for ow in range(OW):
            for kh in range(K):
                for kw in range(K):
                    idx[oh * OW + ow, kh * K + kw] = (oh * S + kh) * W + (ow * S + kw)
    # one-hot gather operator: [256, 49, 16]
    gather = (np.arange(D_IN)[:, None, None] == idx[None]).astype(np.float32)

    # dense conv-equivalent weight; output index = c*49 + p (PyTorch NCHW flatten)
    w_eff = jnp.einsum("qpj,cj->qcp", jnp.asarray(gather),
                       w_conv.reshape(COUT, K * K).astype(jnp.float32)
                       ).reshape(D_IN, D_CONV)
    w_eff = jnp.pad(w_eff, ((0, 0), (0, D_CONV_PAD - D_CONV)))            # [256,384]

    b_conv_flat = jnp.pad(jnp.repeat(b_conv, P),
                          (0, D_CONV_PAD - D_CONV)).reshape(1, D_CONV_PAD)

    w1t = jnp.pad(w1.T, ((0, D_CONV_PAD - D_CONV), (0, D_HID_PAD - D_HID)))  # [384,128]
    b1r = jnp.pad(b1, (0, D_HID_PAD - D_HID)).reshape(1, D_HID_PAD)          # [1,128]
    w2t = jnp.pad(w2.T, ((0, D_HID_PAD - D_HID), (0, D_OUT_PAD - D_OUT)))    # [128,128]
    b2r = jnp.pad(b2, (0, D_OUT_PAD - D_OUT)).reshape(1, D_OUT_PAD)          # [1,128]

    # matmul operands in bf16 (MXU-native, halves weight DMA); biases stay f32
    return (w_eff.astype(jnp.bfloat16),
            b_conv_flat.astype(jnp.float32),
            w1t.astype(jnp.bfloat16),
            b1r.astype(jnp.float32),
            w2t.astype(jnp.bfloat16),
            b2r.astype(jnp.float32))


# ------------------------------ forward pass -------------------------------

def _round_up(x, m):
    return (x + m - 1) // m * m


def m6_forward(x, prep, tb_max=1024, slice_output=True):
    # x: [N, 1, 16, 16] float  ->  [N, 10] float32
    # (slice_output=False returns the lane-dense [rows, 128] padded buffer.)
    N = x.shape[0]
    x_flat = x.reshape(N, D_IN).astype(jnp.bfloat16)

    # Grid first, then tile: padding waste bounded by ROW_ALIGN rows per tile,
    # and an even >=2 step grid (when N is non-tiny) keeps both v7x TCs busy.
    grid = max(-(-N // tb_max), 1)
    if N > ROW_ALIGN:
        grid = _round_up(max(grid, 2), 2)
    tb = _round_up(-(-N // grid), ROW_ALIGN)
    rows = grid * tb
    if rows != N:
        x_flat = jnp.pad(x_flat, ((0, rows - N), (0, 0)))

    out = _fused_call(x_flat, *prep, tb=tb)
    if slice_output:
        out = out[:N, :D_OUT]
    return out


# ------------------------------ init / reference ---------------------------

def init_params(key):
    # deterministic, PyTorch-like uniform(-1/sqrt(fan_in), 1/sqrt(fan_in))
    ks = jax.random.split(key, 6)

    def u(k, shape, fan_in):
        bound = 1.0 / jnp.sqrt(fan_in)
        return jax.random.uniform(k, shape, jnp.float32, -bound, bound)

    w_conv = u(ks[0], (6, 1, 4, 4), 1 * 4 * 4)
    b_conv = u(ks[1], (6,), 1 * 4 * 4)
    w1 = u(ks[2], (64, 294), 294)
    b1 = u(ks[3], (64,), 294)
    w2 = u(ks[4], (10, 64), 64)
    b2 = u(ks[5], (10,), 64)
    return (w_conv, b_conv, w1, b1, w2, b2)


def m6_reference(x, params):
    # pure-JAX f32 reference (XLA conv) for correctness check
    w_conv, b_conv, w1, b1, w2, b2 = params
    conv = jax.lax.conv_general_dilated(
        x, w_conv, window_strides=(2, 2), padding="VALID",
        dimension_numbers=("NCHW", "OIHW", "NCHW"))
    conv = conv + b_conv.reshape(1, 6, 1, 1)
    out = conv ** 2
    out = out.reshape(x.shape[0], -1)
    out = out @ w1.T + b1
    out = out ** 2
    out = out @ w2.T + b2
    return out


if __name__ == "__main__":
    key = jax.random.PRNGKey(0)
    k_x, k_p = jax.random.split(key)

    x = jax.random.normal(k_x, (2, 1, 16, 16), jnp.float32)   # batch=2, NCHW
    params = init_params(k_p)
    prep = prepare_params(params)                             # one-time layout prep

    out = m6_forward(x, prep)
    out = jax.block_until_ready(out)

    ref = m6_reference(x, params)
    assert out.shape == (2, 10)
    # tolerance reflects bf16 matmul inputs (f32 accumulation) with two squarings
    assert jnp.allclose(out, ref, rtol=2e-2, atol=2e-2), (
        f"max abs diff {jnp.max(jnp.abs(out - ref))}")

    print("KERNEL_OK")
</pallas_src>

<mosaic_0001>
module attributes {stable_mosaic.version = 11 : i64} {
  func.func @m6_fused_kernel(%arg0: i32, %arg1: memref<16x256xbf16, #tpu.memory_space<vmem>>, %arg2: memref<256x384xbf16, #tpu.memory_space<vmem>>, %arg3: memref<1x384xf32, #tpu.memory_space<vmem>>, %arg4: memref<384x128xbf16, #tpu.memory_space<vmem>>, %arg5: memref<1x128xf32, #tpu.memory_space<vmem>>, %arg6: memref<128x128xbf16, #tpu.memory_space<vmem>>, %arg7: memref<1x128xf32, #tpu.memory_space<vmem>>, %arg8: memref<16x128xf32, #tpu.memory_space<vmem>>) attributes {dimension_semantics = [#tpu.dimension_semantics<parallel>], iteration_bounds = array<i64: 1>, scalar_prefetch = 0 : i64, scratch_operands = 0 : i64, tpu.core_type = #tpu.core_type<tc>, window_params = [{transform_indices = @transform_0, window_bounds = array<i64: 16, 256>}, {pipeline_mode = #tpu.pipeline_mode<synchronous>, transform_indices = @transform_1, window_bounds = array<i64: 256, 384>}, {pipeline_mode = #tpu.pipeline_mode<synchronous>, transform_indices = @transform_2, window_bounds = array<i64: 1, 384>}, {pipeline_mode = #tpu.pipeline_mode<synchronous>, transform_indices = @transform_3, window_bounds = array<i64: 384, 128>}, {pipeline_mode = #tpu.pipeline_mode<synchronous>, transform_indices = @transform_4, window_bounds = array<i64: 1, 128>}, {pipeline_mode = #tpu.pipeline_mode<synchronous>, transform_indices = @transform_5, window_bounds = array<i64: 128, 128>}, {pipeline_mode = #tpu.pipeline_mode<synchronous>, transform_indices = @transform_6, window_bounds = array<i64: 1, 128>}, {transform_indices = @transform_7, window_bounds = array<i64: 16, 128>}]} {
    %c0 = arith.constant 0 : index
    %c0_0 = arith.constant 0 : index
    %0 = vector.load %arg1[%c0, %c0_0] : memref<16x256xbf16, #tpu.memory_space<vmem>>, vector<16x256xbf16>
    %c0_1 = arith.constant 0 : index
    %c0_2 = arith.constant 0 : index
    %1 = vector.load %arg2[%c0_1, %c0_2] : memref<256x384xbf16, #tpu.memory_space<vmem>>, vector<256x384xbf16>
    %cst = arith.constant dense<0.000000e+00> : vector<16x384xf32>
    %2 = tpu.matmul %0, %1, %cst {dimension_numbers = #tpu.dot_dimension_numbers<[1], [0], [0], [1], [0, 0, 1, 1], [], []>} : vector<16x256xbf16>, vector<256x384xbf16>, vector<16x384xf32> -> vector<16x384xf32>
    %c0_3 = arith.constant 0 : index
    %c0_4 = arith.constant 0 : index
    %3 = vector.load %arg3[%c0_3, %c0_4] : memref<1x384xf32, #tpu.memory_space<vmem>>, vector<1x384xf32>
    %4 = vector.broadcast %3 : vector<1x384xf32> to vector<16x384xf32>
    %5 = arith.addf %2, %4 : vector<16x384xf32>
    %6 = arith.mulf %5, %5 : vector<16x384xf32>
    %7 = arith.truncf %6 : vector<16x384xf32> to vector<16x384xbf16>
    %c0_5 = arith.constant 0 : index
    %c0_6 = arith.constant 0 : index
    %8 = vector.load %arg4[%c0_5, %c0_6] : memref<384x128xbf16, #tpu.memory_space<vmem>>, vector<384x128xbf16>
    %cst_7 = arith.constant dense<0.000000e+00> : vector<16x128xf32>
    %9 = tpu.matmul %7, %8, %cst_7 {dimension_numbers = #tpu.dot_dimension_numbers<[1], [0], [0], [1], [0, 0, 1, 1], [], []>} : vector<16x384xbf16>, vector<384x128xbf16>, vector<16x128xf32> -> vector<16x128xf32>
    %c0_8 = arith.constant 0 : index
    %c0_9 = arith.constant 0 : index
    %10 = vector.load %arg5[%c0_8, %c0_9] : memref<1x128xf32, #tpu.memory_space<vmem>>, vector<1x128xf32>
    %11 = vector.broadcast %10 : vector<1x128xf32> to vector<16x128xf32>
    %12 = arith.addf %9, %11 : vector<16x128xf32>
    %13 = arith.mulf %12, %12 : vector<16x128xf32>
    %14 = arith.truncf %13 : vector<16x128xf32> to vector<16x128xbf16>
    %c0_10 = arith.constant 0 : index
    %c0_11 = arith.constant 0 : index
    %15 = vector.load %arg6[%c0_10, %c0_11] : memref<128x128xbf16, #tpu.memory_space<vmem>>, vector<128x128xbf16>
    %cst_12 = arith.constant dense<0.000000e+00> : vector<16x128xf32>
    %16 = tpu.matmul %14, %15, %cst_12 {dimension_numbers = #tpu.dot_dimension_numbers<[1], [0], [0], [1], [0, 0, 1, 1], [], []>} : vector<16x128xbf16>, vector<128x128xbf16>, vector<16x128xf32> -> vector<16x128xf32>
    %c0_13 = arith.constant 0 : index
    %c0_14 = arith.constant 0 : index
    %17 = vector.load %arg7[%c0_13, %c0_14] : memref<1x128xf32, #tpu.memory_space<vmem>>, vector<1x128xf32>
    %18 = vector.broadcast %17 : vector<1x128xf32> to vector<16x128xf32>
    %19 = arith.addf %16, %18 : vector<16x128xf32>
    %c0_15 = arith.constant 0 : index
    %c0_16 = arith.constant 0 : index
    %20 = vector.load %arg8[%c0_15, %c0_16] : memref<16x128xf32, #tpu.memory_space<vmem>>, vector<16x128xf32>
    tpu.vector_store %arg8[%c0_15, %c0_16], %19 {strides = array<i32>} : memref<16x128xf32, #tpu.memory_space<vmem>>, vector<16x128xf32>,
    return
  }
  func.func @transform_0(%arg0: i32) -> (i32, i32) {
    %c0_i32 = arith.constant 0 : i32
    %c0_i32_0 = arith.constant 0 : i32
    return %arg0, %c0_i32 : i32, i32
  }
  func.func @transform_1(%arg0: i32) -> (i32, i32) {
    %c0_i32 = arith.constant 0 : i32
    %c0_i32_0 = arith.constant 0 : i32
    %c0_i32_1 = arith.constant 0 : i32
    return %c0_i32, %c0_i32_0 : i32, i32
  }
  func.func @transform_2(%arg0: i32) -> (i32, i32) {
    %c0_i32 = arith.constant 0 : i32
    %c0_i32_0 = arith.constant 0 : i32
    %c0_i32_1 = arith.constant 0 : i32
    return %c0_i32, %c0_i32_0 : i32, i32
  }
  func.func @transform_3(%arg0: i32) -> (i32, i32) {
    %c0_i32 = arith.constant 0 : i32
    %c0_i32_0 = arith.constant 0 : i32
    %c0_i32_1 = arith.constant 0 : i32
    return %c0_i32, %c0_i32_0 : i32, i32
  }
  func.func @transform_4(%arg0: i32) -> (i32, i32) {
    %c0_i32 = arith.constant 0 : i32
    %c0_i32_0 = arith.constant 0 : i32
    %c0_i32_1 = arith.constant 0 : i32
    return %c0_i32, %c0_i32_0 : i32, i32
  }
  func.func @transform_5(%arg0: i32) -> (i32, i32) {
    %c0_i32 = arith.constant 0 : i32
    %c0_i32_0 = arith.constant 0 : i32
    %c0_i32_1 = arith.constant 0 : i32
    return %c0_i32, %c0_i32_0 : i32, i32
  }
  func.func @transform_6(%arg0: i32) -> (i32, i32) {
    %c0_i32 = arith.constant 0 : i32
    %c0_i32_0 = arith.constant 0 : i32
    %c0_i32_1 = arith.constant 0 : i32
    return %c0_i32, %c0_i32_0 : i32, i32
  }
  func.func @transform_7(%arg0: i32) -> (i32, i32) {
    %c0_i32 = arith.constant 0 : i32
    %c0_i32_0 = arith.constant 0 : i32
    return %arg0, %c0_i32 : i32, i32
  }
}

</mosaic_0001>

<bundles_post_ra>
// kernel: _fused_call.1
= control target key start
LH: loop header
LB: loop body
LE: loop exit
PB: predicated region body
PF: predicated region fallthrough
CT: control target
= control target key end

     0   :  { %12 = vsyncpa [#allocation3], 0  ;;  %s1451_s0 = inlined_call_operand.hbm [shape: bf16[16,256], index: 0, kind: input, shape index: {}]   ;;  %s1452_s1 = inlined_call_operand.hbm [shape: bf16[256,384], index: 1, kind: input, shape index: {}]   ;;  %s1453_s2 = inlined_call_operand.vmem [shape: f32[1,384], index: 2, kind: input, shape index: {}]   ;;  %s1454_s3 = inlined_call_operand.hbm [shape: bf16[384,128], index: 3, kind: input, shape index: {}]   ;;  %s1455_s4 = inlined_call_operand.vmem [shape: f32[1,128], index: 4, kind: input, shape index: {}]   ;;  %s1456_s5 = inlined_call_operand.hbm [shape: bf16[128,128], index: 5, kind: input, shape index: {}]   ;;  %s1457_s6 = inlined_call_operand.vmem [shape: f32[1,128], index: 6, kind: input, shape index: {}]   ;;  %s1458_s7 = inlined_call_operand.hbm [shape: f32[16,128], index: 7, kind: output, shape index: {}]  }
   0x1   :  { %13 = vsyncpa [#allocation6], 0 }
   0x2   :  { %14 = vsyncpa [#allocation9], 0 }
   0x3   :  { %15 = vsyncpa [#allocation4], 0  ;;  %s1348_s24 = smov [#allocation5]  }
   0x4   :  { %s33_s25 = sshll.u32 %s1348_s24, 4  ;;  %s34_s25 = int_to_ptr.vmem [resolvable:$true] %s33_s25 }
   0x5   :  { %s1248_s26 = scalar_lea.vmem %s34_s25, 6144  ;;  %p1253_p1 = scmp.lt.s32.totalorder %s34_s25, %s34_s25 }
   0x6   :  { %p1249_p0 = scmp.ne.s32.totalorder %s34_s25, %s1248_s26  ;;  %p1254_p2 = scmp.lt.s32.totalorder %s1248_s26, %s1248_s26 }
   0x8   :  { %p1255_p3 = por %p1254_p2, %p1253_p1 }
   0xa   :  { %p1256_p4 = pnand %p1255_p3, %p1249_p0 }
   0xc   :  { %1259 = shalt.err (!%p1256_p4)
}
   0xd   :  { %s1349_s27 = smov 192   ;;  %s1350_s28 = smov 12  }
   0xe   :  { %39 = dma.hbm_to_vmem [thread:$0]  %s1452_s1, 6144, %s34_s25, [#allocation6], %s1349_s27, %s1349_s27, %s1350_s28  }
   0xf   :  { %s1351_s8 = smov [#allocation2]  }
  0x10   :  { %s21_s9 = sshll.u32 %s1351_s8, 4  ;;  %s22_s9 = int_to_ptr.vmem [resolvable:$true] %s21_s9 }
  0x11   :  { %s1268_s10 = scalar_lea.vmem %s22_s9, 256  ;;  %p1273_p6 = scmp.lt.s32.totalorder %s22_s9, %s22_s9 }
  0x12   :  { %p1269_p5 = scmp.ne.s32.totalorder %s22_s9, %s1268_s10  ;;  %p1274_p7 = scmp.lt.s32.totalorder %s1268_s10, %s1268_s10 }
  0x14   :  { %p1275_p8 = por %p1274_p7, %p1273_p6 }
  0x16   :  { %p1276_p9 = pnand %p1275_p8, %p1269_p5 }
  0x18   :  { %1279 = shalt.err (!%p1276_p9)
}
  0x19   :  { %s1352_s11 = smov 128   ;;  %s1353_s12 = smov 8  }
  0x1a   :  { %27 = dma.hbm_to_vmem [thread:$0]  %s1451_s0, 256, %s22_s9, [#allocation3], %s1352_s11, %s1352_s11, %s1353_s12  }
  0x1b   :  { %s1354_s1 = smov [#allocation7]  }
  0x1c   :  { %s47_s15 = sshll.u32 %s1354_s1, 4  ;;  %s48_s15 = int_to_ptr.vmem [resolvable:$true] %s47_s15 }
  0x1d   :  { %s1288_s16 = scalar_lea.vmem %s48_s15, 3072  ;;  %p1293_p11 = scmp.lt.s32.totalorder %s48_s15, %s48_s15 }
  0x1e   :  { %p1289_p10 = scmp.ne.s32.totalorder %s48_s15, %s1288_s16  ;;  %p1294_p12 = scmp.lt.s32.totalorder %s1288_s16, %s1288_s16 }
  0x20   :  { %p1295_p13 = por %p1294_p12, %p1293_p11 }
  0x22   :  { %p1296_p0 = pnand %p1295_p13, %p1289_p10 }
  0x24   :  { %1299 = shalt.err (!%p1296_p0)
}
  0x25   :  { %s1355_s17 = smov 64   ;;  %s1356_s18 = smov 4  }
  0x26   :  { %53 = dma.hbm_to_vmem [thread:$0]  %s1454_s3, 3072, %s48_s15, [#allocation6], %s1355_s17, %s1355_s17, %s1356_s18  }
  0x27   :  { %s1357_s21 = smov [#allocation8]  }
  0x28   :  { %s61_s22 = sshll.u32 %s1357_s21, 4  ;;  %s62_s22 = int_to_ptr.vmem [resolvable:$true] %s61_s22 }
  0x29   :  { %s1308_s0 = scalar_lea.vmem %s62_s22, 1024  ;;  %p1313_p2 = scmp.lt.s32.totalorder %s62_s22, %s62_s22 }
  0x2a   :  { %p1309_p1 = scmp.ne.s32.totalorder %s62_s22, %s1308_s0  ;;  %p1314_p3 = scmp.lt.s32.totalorder %s1308_s0, %s1308_s0 }
  0x2c   :  { %p1315_p4 = por %p1314_p3, %p1313_p2 }
  0x2e   :  { %p1316_p5 = pnand %p1315_p4, %p1309_p1 }
  0x30   :  { %1319 = shalt.err (!%p1316_p5)
}
  0x31   :  { %67 = dma.hbm_to_vmem [thread:$0]  %s1456_s5, 1024, %s62_s22, [#allocation9], %s1355_s17, %s1355_s17, %s1356_s18  }
  0x32   :  { %1340 = dma.done.wait [#allocation3], 256  }
  0x33   :  { %1341 = vsyncadd [#allocation3], 4294967040 }
  0x34   :  { %1342 = dma.done.wait [#allocation6], 9216  }
  0x35   :  { %1343 = vsyncadd [#allocation6], 4294958080 }
  0x36   :  { %1344 = dma.done.wait [#allocation9], 1024  }
  0x37   :  { %1345 = vsyncadd [#allocation9], 4294966272  ;;  %v1141_v0 = vld [vmem:[#allocation5 + $0xac] ss:$12 sps:$4 sm:$0xff]   ;;  %v1143_v1 = vld [vmem:[#allocation5 + $0xa8] ss:$12 sps:$4 sm:$0xff]  }
  0x38   :  { %432 = vmatprep.subr.bf16.mxu0 %v1141_v0  ;;  %v1144_v2 = vld [vmem:[#allocation5 + $0x94] ss:$12 sps:$4 sm:$0xff]   ;;  %v1146_v3 = vld [vmem:[#allocation5 + $0x90] ss:$12 sps:$4 sm:$0xff]   ;;  %v1149_v5 = vld [vmem:[#allocation5 + $0x78] ss:$12 sps:$4 sm:$0xff]  }
  0x39   :  { %433 = vmatpush1.bf16.msra.mxu0 %v1143_v1  ;;  %v1147_v4 = vld [vmem:[#allocation5 + $0x7c] ss:$12 sps:$4 sm:$0xff]   ;;  %v1150_v6 = vld [vmem:[#allocation5 + $0x64] ss:$12 sps:$4 sm:$0xff]   ;;  %v1152_v7 = vld [vmem:[#allocation5 + $0x60] ss:$12 sps:$4 sm:$0xff]  }
  0x3a   :  { %434 = vmatprep.subr.bf16.mxu0 %v1144_v2  ;;  %v1162_v8 = vld [vmem:[#allocation5 + $0x170] ss:$12 sps:$4 sm:$0xff]   ;;  %v1153_v10 = vld [vmem:[#allocation5 + $0x4c] ss:$12 sps:$4 sm:$0xff]   ;;  %v1155_v13 = vld [vmem:[#allocation5 + $0x48] ss:$12 sps:$4 sm:$0xff]  }
  0x3b   :  { %v1163_v9 = vld [vmem:[#allocation5 + $0xb0] ss:$12 sps:$4 sm:$0xff]   ;;  %1026 = vmatprep.subr.bf16.mxu1 %v1162_v8  ;;  %v1167_v11 = vld [vmem:[#allocation5 + $0x158] ss:$12 sps:$4 sm:$0xff]   ;;  %v1156_v14 = vld [vmem:[#allocation5 + $0x34] ss:$12 sps:$4 sm:$0xff]  }
  0x3c   :  { %1027 = vmatpush3.bf16.msra.mxu1 %v1163_v9  ;;  %v1168_v12 = vld [vmem:[#allocation5 + $0x98] ss:$12 sps:$4 sm:$0xff]   ;;  %v1172_v15 = vld [vmem:[#allocation5 + $0x140] ss:$12 sps:$4 sm:$0xff]   ;;  %v1158_v17 = vld [vmem:[#allocation5 + $0x30] ss:$12 sps:$4 sm:$0xff]  }
  0x3d   :  { %435 = vmatpush1.bf16.msra.mxu0 %v1146_v3  ;;  %1028 = vmatprep.subr.bf16.mxu1 %v1167_v11  ;;  %v1173_v16 = vld [vmem:[#allocation5 + $0x80] ss:$12 sps:$4 sm:$0xff]   ;;  %v1159_v18 = vld [vmem:[#allocation5 + $0x1c] ss:$12 sps:$4 sm:$0xff]   ;;  %v1161_v21 = vld [vmem:[#allocation5 + $0x18] ss:$12 sps:$4 sm:$0xff]   ;;  %v151_v11 = vlaneseq }
  0x3e   :  { %436 = vmatprep.subr.bf16.mxu0 %v1147_v4  ;;  %v1177_v19 = vld [vmem:[#allocation5 + $0x128] ss:$12 sps:$4 sm:$0xff]   ;;  %v1182_v22 = vld [vmem:[#allocation5 + $0x110] ss:$12 sps:$4 sm:$0xff]   ;;  %v1187_v25 = vld [vmem:[#allocation5 + $0xf8] ss:$12 sps:$4 sm:$0xff]  }
  0x3f   :  { %v1178_v20 = vld [vmem:[#allocation5 + $0x68] ss:$12 sps:$4 sm:$0xff]   ;;  %v1164_v23 = vld [vmem:[#allocation5 + $0x4] ss:$12 sps:$4 sm:$0xff]   ;;  %v1166_v26 = vld [vmem:[#allocation5] ss:$12 sps:$4 sm:$0xff]  }
  0x40   :  { %1029 = vmatpush3.bf16.msra.mxu1 %v1168_v12  ;;  %v1183_v24 = vld [vmem:[#allocation5 + $0x50] ss:$12 sps:$4 sm:$0xff]   ;;  %v1169_v27 = vld [vmem:[#allocation5 + $0x16c] ss:$12 sps:$4 sm:$0xff]   ;;  %v1171_v30 = vld [vmem:[#allocation5 + $0x168] ss:$12 sps:$4 sm:$0xff]  }
  0x41   :  { %437 = vmatpush1.bf16.msra.mxu0 %v1149_v5  ;;  %1030 = vmatprep.subr.bf16.mxu1 %v1172_v15  ;;  %v1188_v28 = vld [vmem:[#allocation5 + $0x38] ss:$12 sps:$4 sm:$0xff]   ;;  %v1192_v29 = vld [vmem:[#allocation5 + $0xe0] ss:$12 sps:$4 sm:$0xff]   ;;  %v1197_v33 = vld [vmem:[#allocation5 + $0xc8] ss:$12 sps:$4 sm:$0xff]  }
  0x42   :  { %438 = vmatprep.subr.bf16.mxu0 %v1150_v6  ;;  %v1174_v31 = vld [vmem:[#allocation5 + $0x154] ss:$12 sps:$4 sm:$0xff]   ;;  %v1176_v34 = vld [vmem:[#allocation5 + $0x150] ss:$12 sps:$4 sm:$0xff]   ;;  %v1181_v38 = vld [vmem:[#allocation5 + $0x138] ss:$12 sps:$4 sm:$0xff]  }
  0x43   :  { %v1193_v32 = vld [vmem:[#allocation5 + $0x20] ss:$12 sps:$4 sm:$0xff]   ;;  %v1179_v35 = vld [vmem:[#allocation5 + $0x13c] ss:$12 sps:$4 sm:$0xff]   ;;  %v1184_v39 = vld [vmem:[#allocation5 + $0x124] ss:$12 sps:$4 sm:$0xff]  }
  0x44   :  { %1031 = vmatpush3.bf16.msra.mxu1 %v1173_v16  ;;  %v1203_v36 = vld [vmem:[#allocation2 + $0x4] ss:$8 sps:$4 sm:$0xff]   ;;  %v1201_v40 = vld [vmem:[#allocation2] ss:$8 sps:$4 sm:$0xff]   ;;  %v1186_v41 = vld [vmem:[#allocation5 + $0x120] ss:$12 sps:$4 sm:$0xff]  }
  0x45   :  { %439 = vmatpush1.bf16.msra.mxu0 %v1152_v7  ;;  %1032 = vmatprep.subr.bf16.mxu1 %v1177_v19  ;;  %v1198_v37 = vld [vmem:[#allocation5 + $0x8] ss:$12 sps:$4 sm:$0xff]   ;;  %v1210_v42 = vld [vmem:[#allocation7 + $0x78] sm:$0xff]   ;;  %v1205_v54 = vld [vmem:[#allocation5 + $0xc4] ss:$12 sps:$4 sm:$0xff]   ;;  %v1358_v57 = vmov 0.0  }
  0x46   :  { %440 = vmatprep.subr.bf16.mxu0 %v1153_v10  ;;  %507 = vmatprep.mubr.bf16.mxu1 %v1203_v36  ;;  %v1211_v43 = vld [vmem:[#allocation7 + $0x38] sm:$0xff]   ;;  %v1213_v45 = vld [vmem:[#allocation7 + $0x70] sm:$0xff]   ;;  %v1216_v49 = vld [vmem:[#allocation7 + $0x68] sm:$0xff]   ;;  %vm1359_vm0 = vmmov 0   ;;  %v152_v12 = vshrl.u32 %v151_v11, 7 }
  0x47   :  { %464 = vmatprep.mubr.bf16.mxu0 %v1203_v36  ;;  %v1189_v44 = vld [vmem:[#allocation5 + $0x10c] ss:$12 sps:$4 sm:$0xff]   ;;  %v1191_v46 = vld [vmem:[#allocation5 + $0x108] ss:$12 sps:$4 sm:$0xff]   ;;  %v1196_v51 = vld [vmem:[#allocation5 + $0xf0] ss:$12 sps:$4 sm:$0xff]  }
  0x48   :  { %1033 = vmatpush3.bf16.msra.mxu1 %v1178_v20  ;;  %v1214_v47 = vld [vmem:[#allocation7 + $0x30] sm:$0xff]   ;;  %v1217_v50 = vld [vmem:[#allocation7 + $0x28] sm:$0xff]   ;;  %v1204_v53 = vld [vmem:[#allocation5 + $0xd8] ss:$12 sps:$4 sm:$0xff]  }
  0x49   :  { %441 = vmatpush1.bf16.msra.mxu0 %v1155_v13  ;;  %1034 = vmatprep.subr.bf16.mxu1 %v1182_v22  ;;  %v1194_v48 = vld [vmem:[#allocation5 + $0xf4] ss:$12 sps:$4 sm:$0xff]   ;;  %v1199_v52 = vld [vmem:[#allocation5 + $0xdc] ss:$12 sps:$4 sm:$0xff]   ;;  %v161_v13 = vsub.s32 2, %v152_v12 }
  0x4a   :  { %442 = vmatprep.subr.bf16.mxu0 %v1156_v14  ;;  %v1207_v55 = vld [vmem:[#allocation5 + $0xc0] ss:$12 sps:$4 sm:$0xff]   ;;  %v1208_v56 = vld [vmem:[#allocation7 + $0xb8] sm:$0xff]   ;;  %v1209_v58 = vld [vmem:[#allocation7 + $0xb0] sm:$0xff]  }
  0x4b   :  { %v1212_v59 = vld [vmem:[#allocation7 + $0xa8] sm:$0xff]   ;;  %v1215_v60 = vld [vmem:[#allocation7 + $0xa0] sm:$0xff]   ;;  %v1218_v61 = vld [vmem:[#allocation7 + $0x98] sm:$0xff]  }
  0x4c   :  { %1035 = vmatpush3.bf16.msra.mxu1 %v1183_v24  ;;  %v1219_v62 = vld [vmem:[#allocation7 + $0x60] sm:$0xff]   ;;  %v1221_v0 = vld [vmem:[#allocation7 + $0x90] sm:$0xff]   ;;  %v1222_v1 = vld [vmem:[#allocation7 + $0x58] sm:$0xff]  }
  0x4d   :  { %443 = vmatpush1.bf16.msra.mxu0 %v1158_v17  ;;  %1036 = vmatprep.subr.bf16.mxu1 %v1187_v25  ;;  %v1220_v63 = vld [vmem:[#allocation7 + $0x20] sm:$0xff]   ;;  %v1223_v2 = vld [vmem:[#allocation7 + $0x18] sm:$0xff]   ;;  %v1224_v3 = vld [vmem:[#allocation7 + $0x88] sm:$0xff]  }
  0x4e   :  { %444 = vmatprep.subr.bf16.mxu0 %v1159_v18  ;;  %v1225_v4 = vld [vmem:[#allocation7 + $0x50] sm:$0xff]   ;;  %v1227_v6 = vld [vmem:[#allocation7 + $0x80] sm:$0xff]   ;;  %v1228_v7 = vld [vmem:[#allocation7 + $0x48] sm:$0xff]  }
  0x4f   :  { %v1226_v5 = vld [vmem:[#allocation7 + $0x10] sm:$0xff]   ;;  %v1229_v8 = vld [vmem:[#allocation7 + $0x8] sm:$0xff]   ;;  %v1230_v9 = vld [vmem:[#allocation7 + $0x40] sm:$0xff]  }
  0x50   :  { %1037 = vmatpush3.bf16.msra.mxu1 %v1188_v28  ;;  %v1231_v10 = vld [vmem:[#allocation7] sm:$0xff]   ;;  %v149_v14 = vld [vmem:[%s1453_s2] sm:$0x7]  ;;  %v153_v28 = vsub.s32 0, %v152_v12 }
  0x51   :  { %445 = vmatpush1.bf16.msra.mxu0 %v1161_v21  ;;  %1038 = vmatprep.subr.bf16.mxu1 %v1192_v29  ;;  %v162_v16 = vrot.slane %v149_v14, %v161_v13 }
  0x52   :  { %446 = vmatprep.subr.bf16.mxu0 %v1164_v23 }
  0x54   :  { %1039 = vmatpush3.bf16.msra.mxu1 %v1193_v32 }
  0x55   :  { %447 = vmatpush1.bf16.msra.mxu0 %v1166_v26  ;;  %1040 = vmatprep.subr.bf16.mxu1 %v1197_v33 }
  0x56   :  { %448 = vmatprep.subr.bf16.mxu0 %v1169_v27  ;;  %v157_v27 = vsub.s32 1, %v152_v12 }
  0x58   :  { %1041 = vmatpush3.bf16.msra.mxu1 %v1198_v37 }
  0x59   :  { %449 = vmatpush2.bf16.msra.mxu0 %v1171_v30  ;;  %1048 = vmatprep.subr.bf16.mxu1 %v1210_v42  ;;  %v158_v30 = vrot.slane %v149_v14, %v157_v27 }
  0x5a   :  { %450 = vmatprep.subr.bf16.mxu0 %v1174_v31  ;;  %v154_v31 = vrot.slane %v149_v14, %v153_v28 }
  0x5b   :  { %508 = vmatmul.mubr.bf16.vlgmr.msra.gmra.mxu1 %v1201_v40 }
  0x5c   :  { %1049 = vmatpush3.bf16.msra.mxu1 %v1211_v43 }
  0x5d   :  { %451 = vmatpush2.bf16.msra.mxu0 %v1176_v34  ;;  %1050 = vmatprep.subr.bf16.mxu1 %v1213_v45 }
  0x5e   :  { %452 = vmatprep.subr.bf16.mxu0 %v1179_v35 }
  0x60   :  { %1051 = vmatpush3.bf16.msra.mxu1 %v1214_v47  ;;  %v1234_v47 = vld [vmem:[#allocation8 + $0x28] sm:$0xff]  }
  0x61   :  { %453 = vmatpush2.bf16.msra.mxu0 %v1181_v38  ;;  %1052 = vmatprep.subr.bf16.mxu1 %v1216_v49  ;;  %v1236_v49 = vld [vmem:[#allocation8 + $0x18] sm:$0xff]  }
  0x62   :  { %454 = vmatprep.subr.bf16.mxu0 %v1184_v39 }
  0x64   :  { %1053 = vmatpush3.bf16.msra.mxu1 %v1217_v50  ;;  %v1237_v50 = vld [vmem:[#allocation8 + $0x10] sm:$0xff]  }
  0x65   :  { %455 = vmatpush2.bf16.msra.mxu0 %v1186_v41  ;;  %1054 = vmatprep.subr.bf16.mxu1 %v1219_v62 }
  0x66   :  { %456 = vmatprep.subr.bf16.mxu0 %v1189_v44  ;;  %v1232_v44 = vld [vmem:[#allocation8 + $0x38] sm:$0xff]  }
  0x68   :  { %1055 = vmatpush3.bf16.msra.mxu1 %v1220_v63 }
  0x69   :  { %457 = vmatpush2.bf16.msra.mxu0 %v1191_v46  ;;  %1056 = vmatprep.subr.bf16.mxu1 %v1222_v1  ;;  %v1233_v46 = vld [vmem:[#allocation8 + $0x30] sm:$0xff]  }
  0x6a   :  { %458 = vmatprep.subr.bf16.mxu0 %v1194_v48  ;;  %v1235_v48 = vld [vmem:[#allocation8 + $0x20] sm:$0xff]  }
  0x6c   :  { %1057 = vmatpush3.bf16.msra.mxu1 %v1223_v2 }
  0x6d   :  { %459 = vmatpush2.bf16.msra.mxu0 %v1196_v51  ;;  %1058 = vmatprep.subr.bf16.mxu1 %v1225_v4  ;;  %v1238_v51 = vld [vmem:[#allocation8 + $0x8] sm:$0xff]  }
  0x6e   :  { %460 = vmatprep.subr.bf16.mxu0 %v1199_v52  ;;  %v1239_v52 = vld [vmem:[#allocation8] sm:$0xff]  }
  0x70   :  { %1059 = vmatpush3.bf16.msra.mxu1 %v1226_v5 }
  0x71   :  { %461 = vmatpush2.bf16.msra.mxu0 %v1204_v53  ;;  %1060 = vmatprep.subr.bf16.mxu1 %v1228_v7  ;;  %v1017_v7 = vld [vmem:[%s1457_s6] ss:$0 sm:$0xff] }
  0x72   :  { %462 = vmatprep.subr.bf16.mxu0 %v1205_v54 }
  0x74   :  { %1061 = vmatpush3.bf16.msra.mxu1 %v1229_v8 }
  0x75   :  { %463 = vmatpush2.bf16.msra.mxu0 %v1207_v55  ;;  %1062 = vmatprep.subr.bf16.mxu1 %v1230_v9 }
  0x76   :  { %1088 = vmatprep.subr.bf16.mxu0 %v1358_v57 }
  0x78   :  { %465 = vmatmul.mubr.bf16.vlgmr.msra.gmra.mxu0 %v1201_v40  ;;  %1063 = vmatpush3.bf16.msra.mxu1 %v1231_v10 }
  0x79   :  { %1089 = vmatpush3.bf16.msra.mxu0 %v1208_v56  ;;  %1104 = vmatprep.mubr.msk.bf16.mxu0 %vm1359_vm0, %v1358_v57 }
  0x7a   :  { %1090 = vmatprep.subr.bf16.mxu0 %v1358_v57  ;;  %1108 = vmatprep.subr.bf16.mxu1 %v1358_v57 }
  0x7d   :  { %1091 = vmatpush3.bf16.msra.mxu0 %v1209_v58 }
  0x7e   :  { %1092 = vmatprep.subr.bf16.mxu0 %v1358_v57 }
  0x81   :  { %1093 = vmatpush3.bf16.msra.mxu0 %v1212_v59  ;;  %v992_v59 = vld [vmem:[%s1455_s4] ss:$0 sm:$0xff]  ;;  %s1360_s4 = smov [#allocation10]  }
  0x82   :  { %1094 = vmatprep.subr.bf16.mxu0 %v1358_v57  ;;  %s928_s28 = sshll.u32 %s1360_s4, 4  ;;  %s929_s28 = int_to_ptr.vmem [resolvable:$true] %s928_s28 }
  0x83   :  { %s1320_s29 = scalar_lea.vmem %s929_s28, 256  ;;  %p1325_p7 = scmp.lt.s32.totalorder %s929_s28, %s929_s28 }
  0x84   :  { %p1321_p6 = scmp.ne.s32.totalorder %s929_s28, %s1320_s29  ;;  %p1326_p8 = scmp.lt.s32.totalorder %s1320_s29, %s1320_s29 }
  0x85   :  { %1095 = vmatpush3.bf16.msra.mxu0 %v1215_v60 }
  0x86   :  { %1096 = vmatprep.subr.bf16.mxu0 %v1358_v57  ;;  %p1327_p9 = por %p1326_p8, %p1325_p7 }
  0x88   :  { %p1328_p10 = pnand %p1327_p9, %p1321_p6 }
  0x89   :  { %1097 = vmatpush3.bf16.msra.mxu0 %v1218_v61 }
  0x8a   :  { %1098 = vmatprep.subr.bf16.mxu0 %v1358_v57 }
  0x8d   :  { %1099 = vmatpush3.bf16.msra.mxu0 %v1221_v0 }
  0x8e   :  { %1100 = vmatprep.subr.bf16.mxu0 %v1358_v57 }
  0x91   :  { %1101 = vmatpush3.bf16.msra.mxu0 %v1224_v3 }
  0x92   :  { %1102 = vmatprep.subr.bf16.mxu0 %v1358_v57 }
  0x95   :  { %1103 = vmatpush3.bf16.msra.mxu0 %v1227_v6 }
 0x11b   :  { %v1042_v15 = vpop.f32.mrf.mxu1 }
 0x11d   :  { %v1043_v17 = vpop.f32.mrf.mxu1 }
 0x11e   :  { %v1044_v18 = vadd.f32 %v1043_v17, %v1042_v15 }
 0x11f   :  { %v1045_v19 = vpop.f32.mrf.mxu1 }
 0x120   :  { %v510_v20 = vadd.f32 %v1044_v18, %v162_v16 }
 0x121   :  { %v1046_v21 = vpop.f32.mrf.mxu1 }
 0x122   :  { %v1047_v22 = vadd.f32 %v1046_v21, %v1045_v19  ;;  %v518_v23 = vmul.f32 %v510_v20, %v510_v20 }
 0x124   :  { %v513_v24 = vadd.f32 %v1047_v22, %v162_v16 }
 0x126   :  { %v521_v25 = vmul.f32 %v513_v24, %v513_v24 }
 0x128   :  { %v524_v26 = vpack.c.bf16 %v521_v25, %v518_v23 }
 0x12a   :  { %1105 = vmatmul.mubr.bf16.vlgmr.msra.gmra.mxu0 %v524_v26 }
 0x138   :  { %v466_v29 = vpop.f32.mrf.mxu0 }
 0x139   :  { %v467_v36 = vadd.f32 %v466_v29, %v154_v31 }
 0x13a   :  { %v468_v32 = vpop.f32.mrf.mxu0 }
 0x13b   :  { %v469_v34 = vadd.f32 %v468_v32, %v158_v30  ;;  %v516_v42 = vmul.f32 %v467_v36, %v467_v36 }
 0x13c   :  { %v470_v33 = vpop.f32.mrf.mxu0 }
 0x13d   :  { %v471_v35 = vadd.f32 %v470_v33, %v154_v31  ;;  %v517_v40 = vmul.f32 %v469_v34, %v469_v34 }
 0x13e   :  { %v472_v37 = vpop.f32.mrf.mxu0 }
 0x13f   :  { %v473_v38 = vadd.f32 %v472_v37, %v158_v30  ;;  %v519_v39 = vmul.f32 %v471_v35, %v471_v35 }
 0x141   :  { %v520_v41 = vmul.f32 %v473_v38, %v473_v38  ;;  %v522_v45 = vpack.c.bf16 %v519_v39, %v516_v42 }
 0x143   :  { %v523_v43 = vpack.c.bf16 %v520_v41, %v517_v40 }
 0x145   :  { %756 = vmatprep.mubr.bf16.mxu1 %v523_v43 }
 0x146   :  { %757 = vmatmul.mubr.bf16.vlgmr.msra.gmra.mxu1 %v522_v45 }
 0x147   :  { %1109 = vmatpush3.bf16.msra.mxu1 %v1232_v44  ;;  %1124 = vmatprep.mubr.msk.bf16.mxu1 %vm1359_vm0, %v1358_v57 }
 0x148   :  { %1110 = vmatprep.subr.bf16.mxu1 %v1358_v57 }
 0x14b   :  { %1111 = vmatpush3.bf16.msra.mxu1 %v1233_v46 }
 0x14c   :  { %1112 = vmatprep.subr.bf16.mxu1 %v1358_v57 }
 0x14f   :  { %1113 = vmatpush3.bf16.msra.mxu1 %v1234_v47 }
 0x150   :  { %1114 = vmatprep.subr.bf16.mxu1 %v1358_v57 }
 0x153   :  { %1115 = vmatpush3.bf16.msra.mxu1 %v1235_v48 }
 0x154   :  { %1116 = vmatprep.subr.bf16.mxu1 %v1358_v57 }
 0x157   :  { %1117 = vmatpush3.bf16.msra.mxu1 %v1236_v49 }
 0x158   :  { %1118 = vmatprep.subr.bf16.mxu1 %v1358_v57 }
 0x15b   :  { %1119 = vmatpush3.bf16.msra.mxu1 %v1237_v50 }
 0x15c   :  { %1120 = vmatprep.subr.bf16.mxu1 %v1358_v57 }
 0x15f   :  { %1121 = vmatpush3.bf16.msra.mxu1 %v1238_v51 }
 0x160   :  { %1122 = vmatprep.subr.bf16.mxu1 %v1358_v57 }
 0x163   :  { %1123 = vmatpush3.bf16.msra.mxu1 %v1239_v52 }
 0x1ea   :  { %v799_v53 = vpop.f32.mrf.mxu0 }
 0x1ec   :  { %v1106_v54 = vpop.f32.mrf.mxu0 }
 0x1ee   :  { %v802_v55 = vpop.f32.mrf.mxu0 }
 0x1f0   :  { %v1107_v56 = vpop.f32.mrf.mxu0 }
 0x206   :  { %v1064_v58 = vpop.f32.mrf.mxu1 }
 0x208   :  { %v1065_v60 = vpop.f32.mrf.mxu1 }
 0x209   :  { %v1066_v61 = vadd.f32 %v1065_v60, %v1064_v58 }
 0x20a   :  { %v1067_v62 = vpop.f32.mrf.mxu1 }
 0x20b   :  { %v759_v63 = vadd.f32 %v1066_v61, %v992_v59 }
 0x20c   :  { %v1068_v0 = vpop.f32.mrf.mxu1 }
 0x20d   :  { %v1069_v1 = vadd.f32 %v1068_v0, %v1067_v62  ;;  %v800_v2 = vadd.f32 %v799_v53, %v759_v63 }
 0x20f   :  { %v762_v3 = vadd.f32 %v1069_v1, %v992_v59  ;;  %v806_v4 = vmul.f32 %v800_v2, %v800_v2 }
 0x211   :  { %v803_v57 = vadd.f32 %v802_v55, %v762_v3 }
 0x213   :  { %v807_v5 = vmul.f32 %v803_v57, %v803_v57 }
 0x215   :  { %v808_v6 = vpack.c.bf16 %v807_v5, %v806_v4 }
 0x217   :  { %1125 = vmatmul.mubr.bf16.vlgmr.msra.gmra.mxu1 %v808_v6 }
 0x2d7   :  { %v914_v8 = vpop.f32.mrf.mxu1 }
 0x2d8   :  { %v915_v9 = vadd.f32 %v1017_v7, %v914_v8 }
 0x2d9   :  { %v1126_v10 = vpop.f32.mrf.mxu1 }
 0x2da   :  { %921 = vst [vmem:[#allocation10] sm:$0xff] %v915_v9 }
 0x2db   :  { %v917_v11 = vpop.f32.mrf.mxu1 }
 0x2dc   :  { %v918_v12 = vadd.f32 %v1017_v7, %v917_v11 }
 0x2dd   :  { %v1127_v13 = vpop.f32.mrf.mxu1 }
 0x2de   :  { %922 = vst [vmem:[#allocation10 + $0x8] sm:$0xff] %v918_v12 }
 0x2df   :  { %1331 = shalt.err (!%p1328_p10)
}
 0x2e0   :  { %934 = dma.vmem_to_hbm [thread:$0]  %s929_s28, 256, %s1458_s7, [#allocation4], %s1352_s11, %s1352_s11, %s1353_s12  }
 0x2e1   :  { %1346 = dma.done.wait [#allocation4], 256  }
 0x2e2   :  { %1347 = vsyncadd [#allocation4], 4294967040 }
 0x2e3   :  { %938 = vsyncpa [#allocation3], 1 }
 0x2e4   :  { %939 = vsyncpa [#allocation6], 1 }
 0x2e5   :  { %940 = vsyncpa [#allocation9], 1 }
 0x2e6   :  { %941 = vsyncpa [#allocation4], 1 }

</bundles_post_ra>
